<compile_context>
chip_gen: v7x
topology: tpu7x:2x2x1
jax: 0.10.0
libtpu: 0.0.40
codegen_flags: <defaults>
</compile_context>

<pallas_src>
import functools
import math

import jax
import jax.numpy as jnp
from jax.experimental import pallas as pl
from jax.experimental.pallas import tpu as pltpu


def _round_up(x, m):
    return ((x + m - 1) // m) * m


def _label_smoothing_kernel(x_ref, t_ref, loss_ref, *opt_td_ref,
                            smooth_val, log_smooth, confidence, log_conf,
                            padding_idx, vocab_size, n_rows):
    tn, tv = x_ref.shape
    row_start = pl.program_id(0) * tn
    col_start = pl.program_id(1) * tv

    x = x_ref[...].astype(jnp.float32)            # (tn, tv) log-probs
    tgt = t_ref[...]                              # (tn, 1)  int32

    # Row tail: OOB rows of the last row-tile hold garbage targets; clamping
    # them to padding_idx makes them zero rows (zero td, zero loss) and their
    # td writes are discarded by the partial output block anyway.
    row_idx = jax.lax.broadcasted_iota(jnp.int32, (tn, 1), 0) + row_start
    tgt = jnp.where(row_idx >= jnp.int32(n_rows), jnp.int32(padding_idx), tgt)

    # Local lane iota; shift the scalar comparands by the tile's column start
    # instead of adding the offset to every element (saves a per-element add).
    col = jax.lax.broadcasted_iota(jnp.int32, (tn, tv), 1)
    tgt_local = tgt - col_start                       # (tn, 1)
    pad_local = jnp.int32(padding_idx) - col_start    # scalar
    v_local = jnp.int32(vocab_size) - col_start       # scalar

    is_tgt = col == tgt_local
    is_pad_row = tgt == jnp.int32(padding_idx)        # (tn, 1)
    # Fused zero mask: padded rows, the padding column, and the column tail.
    zero_mask = is_pad_row | (col == pad_local) | (col >= v_local)

    td = jnp.where(is_tgt, jnp.float32(confidence), jnp.float32(smooth_val))
    td = jnp.where(zero_mask, jnp.float32(0.0), td)
    if opt_td_ref:
        opt_td_ref[0][...] = td.astype(opt_td_ref[0].dtype)

    # log(true_dist) takes only two non-zero values -> constant select, no
    # transcendental.  Use a select (not a multiply) for masking so garbage /
    # -inf values of x in masked positions contribute exactly 0 (no NaN).
    keep = jnp.logical_not(zero_mask)
    if smooth_val == 0.0:       # smoothing == 0 or size <= 2: only target col
        keep = keep & is_tgt
    if confidence == 0.0:       # smoothing == 1: target col contributes 0
        keep = keep & jnp.logical_not(is_tgt)
    log_td = jnp.where(is_tgt, jnp.float32(log_conf), jnp.float32(log_smooth))
    contrib = jnp.where(keep, td * (log_td - x), jnp.float32(0.0))

    # One scalar partial per grid step, written to a (1,1) SMEM block.
    loss_ref[0, 0] = jnp.sum(contrib)


def label_smoothing(x, target, *, size, padding_idx, smoothing,
                    tile_rows=256, tile_cols=2048, return_true_dist=True):
    """Forward of the PyTorch LabelSmoothing module.

    Returns (loss, true_dist) if return_true_dist else loss.
    """
    n, v = x.shape
    assert v == size, "x.shape[1] must equal `size`"

    smoothing = float(smoothing)
    confidence = 1.0 - smoothing
    smooth_val = smoothing / (size - 2) if size > 2 else 0.0
    # Guards so 0 * log(0) positions contribute exactly 0 (no NaN/Inf).
    log_smooth = math.log(smooth_val) if smooth_val > 0.0 else 0.0
    log_conf = math.log(confidence) if confidence > 0.0 else 0.0

    # Lane-dense tiles: tv multiple of 128, tn multiple of 8.  Default
    # 256x2048 f32 (~8 MiB double-buffered incl. td) fits the default scoped
    # VMEM limit on v5e/v6e/v7x.  Tails are handled in-kernel.
    tn = min(int(tile_rows), _round_up(n, 8))
    tv = min(int(tile_cols), _round_up(v, 128))
    grid = (pl.cdiv(n, tn), pl.cdiv(v, tv))

    tgt2d = target.astype(jnp.int32).reshape(n, 1)

    kernel = functools.partial(
        _label_smoothing_kernel,
        smooth_val=smooth_val,
        log_smooth=log_smooth,
        confidence=confidence,
        log_conf=log_conf,
        padding_idx=int(padding_idx),
        vocab_size=int(size),
        n_rows=int(n),
    )

    out_specs = [pl.BlockSpec((1, 1), lambda i, j: (i, j),
                              memory_space=pltpu.MemorySpace.SMEM)]
    out_shape = [jax.ShapeDtypeStruct(grid, jnp.float32)]
    if return_true_dist:
        out_specs.append(pl.BlockSpec((tn, tv), lambda i, j: (i, j)))
        out_shape.append(jax.ShapeDtypeStruct((n, v), x.dtype))

    outs = pl.pallas_call(
        kernel,
        grid=grid,
        in_specs=[
            pl.BlockSpec((tn, tv), lambda i, j: (i, j)),   # x tile (native dtype)
            pl.BlockSpec((tn, 1), lambda i, j: (i, 0)),    # target column tile
        ],
        out_specs=tuple(out_specs),
        out_shape=tuple(out_shape),
        compiler_params=pltpu.CompilerParams(
            dimension_semantics=("parallel", "parallel")),
    )(x, tgt2d)

    loss = jnp.sum(outs[0])
    if return_true_dist:
        return loss, outs[1]
    return loss


def _reference(x, target, *, padding_idx, smoothing):
    n, v = x.shape
    confidence = 1.0 - smoothing
    col = jnp.arange(v)[None, :]
    tgt = target[:, None]
    td = jnp.full((n, v), smoothing / (v - 2), jnp.float32)
    td = jnp.where(col == tgt, confidence, td)
    td = jnp.where(col == padding_idx, 0.0, td)
    td = jnp.where(tgt == padding_idx, 0.0, td)
    xf = x.astype(jnp.float32)
    contrib = jnp.where(td > 0, td * (jnp.log(jnp.maximum(td, 1e-30)) - xf), 0.0)
    return jnp.sum(contrib), td


if __name__ == "__main__":
    PADDING_IDX = 0
    SMOOTHING = 0.1
    key = jax.random.PRNGKey(0)
    k1, k2, k3, k4 = jax.random.split(key, 4)

    # Case 1: small shapes, single padded tile in both dims (row + col tails).
    N1, V1 = 10, 32
    x1 = jax.nn.log_softmax(
        jax.random.normal(k1, (N1, V1), dtype=jnp.float32), axis=-1)
    t1 = jax.random.randint(k2, (N1,), 0, V1, dtype=jnp.int32)
    t1 = t1.at[3].set(PADDING_IDX)                 # ensure a padded row exists

    loss1, td1 = label_smoothing(
        x1, t1, size=V1, padding_idx=PADDING_IDX, smoothing=SMOOTHING)
    loss1 = jax.block_until_ready(loss1)
    td1 = jax.block_until_ready(td1)

    ref_loss1, ref_td1 = _reference(
        x1, t1, padding_idx=PADDING_IDX, smoothing=SMOOTHING)
    assert jnp.allclose(loss1, ref_loss1, rtol=1e-5, atol=1e-5), (loss1, ref_loss1)
    assert jnp.allclose(td1, ref_td1, rtol=1e-6, atol=1e-6)

    # Case 2: multi-tile grid (3 x 4) with row & column tails, loss-only mode.
    N2, V2 = 300, 1000
    x2 = jax.nn.log_softmax(
        jax.random.normal(k3, (N2, V2), dtype=jnp.float32), axis=-1)
    t2 = jax.random.randint(k4, (N2,), 0, V2, dtype=jnp.int32)
    t2 = t2.at[::7].set(PADDING_IDX)

    loss2 = label_smoothing(
        x2, t2, size=V2, padding_idx=PADDING_IDX, smoothing=SMOOTHING,
        tile_rows=128, tile_cols=256, return_true_dist=False)
    loss2 = jax.block_until_ready(loss2)

    ref_loss2, _ = _reference(
        x2, t2, padding_idx=PADDING_IDX, smoothing=SMOOTHING)
    assert jnp.allclose(loss2, ref_loss2, rtol=1e-4, atol=1e-4), (loss2, ref_loss2)

    print("KERNEL_OK")
</pallas_src>

<mosaic_0001>
module attributes {stable_mosaic.version = 11 : i64} {
  func.func @_label_smoothing_kernel(%arg0: i32, %arg1: i32, %arg2: memref<16x128xf32, #tpu.memory_space<vmem>>, %arg3: memref<16x1xi32, #tpu.memory_space<vmem>>, %arg4: memref<1x1xf32, #tpu.memory_space<smem>>, %arg5: memref<16x128xf32, #tpu.memory_space<vmem>>) attributes {dimension_semantics = [#tpu.dimension_semantics<parallel>, #tpu.dimension_semantics<parallel>], iteration_bounds = array<i64: 1, 1>, scalar_prefetch = 0 : i64, scratch_operands = 0 : i64, tpu.core_type = #tpu.core_type<tc>, window_params = [{transform_indices = @transform_0, window_bounds = array<i64: 16, 128>}, {transform_indices = @transform_1, window_bounds = array<i64: 16, 1>}, {transform_indices = @transform_2, window_bounds = array<i64: 1, 1>}, {transform_indices = @transform_3, window_bounds = array<i64: 16, 128>}]} {
    %c16_i32 = arith.constant 16 : i32
    %0 = arith.muli %arg0, %c16_i32 : i32
    %c128_i32 = arith.constant 128 : i32
    %1 = arith.muli %arg1, %c128_i32 : i32
    %c0 = arith.constant 0 : index
    %c0_0 = arith.constant 0 : index
    %2 = vector.load %arg2[%c0, %c0_0] : memref<16x128xf32, #tpu.memory_space<vmem>>, vector<16x128xf32>
    %c0_1 = arith.constant 0 : index
    %c0_2 = arith.constant 0 : index
    %3 = vector.load %arg3[%c0_1, %c0_2] : memref<16x1xi32, #tpu.memory_space<vmem>>, vector<16x1xi32>
    %4 = tpu.iota {dimensions = array<i32: 0>} : vector<16x1xi32>
    %5 = vector.broadcast %0 : i32 to vector<16x1xi32>
    %6 = arith.addi %4, %5 : vector<16x1xi32>
    %c10_i32 = arith.constant 10 : i32
    %7 = vector.broadcast %c10_i32 : i32 to vector<16x1xi32>
    %8 = arith.cmpi sge, %6, %7 : vector<16x1xi32>
    %c0_i32 = arith.constant 0 : i32
    %9 = vector.broadcast %c0_i32 : i32 to vector<16x1xi32>
    %10 = arith.select %8, %9, %3 : vector<16x1xi1>, vector<16x1xi32>
    %11 = tpu.iota {dimensions = array<i32: 1>} : vector<16x128xi32>
    %12 = vector.broadcast %1 : i32 to vector<16x1xi32>
    %13 = arith.subi %10, %12 : vector<16x1xi32>
    %c0_i32_3 = arith.constant 0 : i32
    %14 = arith.subi %c0_i32_3, %1 : i32
    %c32_i32 = arith.constant 32 : i32
    %15 = arith.subi %c32_i32, %1 : i32
    %16 = vector.broadcast %13 : vector<16x1xi32> to vector<16x128xi32>
    %17 = arith.cmpi eq, %11, %16 : vector<16x128xi32>
    %c0_i32_4 = arith.constant 0 : i32
    %18 = vector.broadcast %c0_i32_4 : i32 to vector<16x1xi32>
    %19 = arith.cmpi eq, %10, %18 : vector<16x1xi32>
    %20 = vector.broadcast %14 : i32 to vector<16x128xi32>
    %21 = arith.cmpi eq, %11, %20 : vector<16x128xi32>
    %22 = vector.broadcast %19 : vector<16x1xi1> to vector<16x128xi1>
    %23 = arith.ori %22, %21 : vector<16x128xi1>
    %24 = vector.broadcast %15 : i32 to vector<16x128xi32>
    %25 = arith.cmpi sge, %11, %24 : vector<16x128xi32>
    %26 = arith.ori %23, %25 : vector<16x128xi1>
    %cst = arith.constant 0.899999976 : f32
    %cst_5 = arith.constant 0.00333333341 : f32
    %27 = vector.broadcast %cst : f32 to vector<16x128xf32>
    %28 = vector.broadcast %cst_5 : f32 to vector<16x128xf32>
    %29 = arith.select %17, %27, %28 : vector<16x128xi1>, vector<16x128xf32>
    %cst_6 = arith.constant 0.000000e+00 : f32
    %30 = vector.broadcast %cst_6 : f32 to vector<16x128xf32>
    %31 = arith.select %26, %30, %29 : vector<16x128xi1>, vector<16x128xf32>
    %c0_7 = arith.constant 0 : index
    %c0_8 = arith.constant 0 : index
    %32 = vector.load %arg5[%c0_7, %c0_8] : memref<16x128xf32, #tpu.memory_space<vmem>>, vector<16x128xf32>
    tpu.vector_store %arg5[%c0_7, %c0_8], %31 {strides = array<i32>} : memref<16x128xf32, #tpu.memory_space<vmem>>, vector<16x128xf32>,
    %cst_9 = arith.constant dense<true> : vector<16x128xi1>
    %33 = arith.xori %26, %cst_9 : vector<16x128xi1>
    %cst_10 = arith.constant -0.105360515 : f32
    %cst_11 = arith.constant -5.70378256 : f32
    %34 = vector.broadcast %cst_10 : f32 to vector<16x128xf32>
    %35 = vector.broadcast %cst_11 : f32 to vector<16x128xf32>
    %36 = arith.select %17, %34, %35 : vector<16x128xi1>, vector<16x128xf32>
    %37 = arith.subf %36, %2 : vector<16x128xf32>
    %38 = arith.mulf %31, %37 : vector<16x128xf32>
    %cst_12 = arith.constant 0.000000e+00 : f32
    %39 = vector.broadcast %cst_12 : f32 to vector<16x128xf32>
    %40 = arith.select %33, %38, %39 : vector<16x128xi1>, vector<16x128xf32>
    %41 = vector.shape_cast %40 : vector<16x128xf32> to vector<1x16x128xf32>
    %cst_13 = arith.constant dense<0.000000e+00> : vector<1xf32>
    %42 = vector.multi_reduction <add>, %41, %cst_13 [1, 2] : vector<1x16x128xf32> to vector<1xf32>
    %43 = vector.shape_cast %42 : vector<1xf32> to vector<1x1x1xf32>
    %44 = vector.extract %43[0, 0, 0] : f32 from vector<1x1x1xf32>
    %c0_14 = arith.constant 0 : index
    %c0_15 = arith.constant 0 : index
    %45 = memref.load %arg4[%c0_14, %c0_15] : memref<1x1xf32, #tpu.memory_space<smem>>
    memref.store %44, %arg4[%c0_14, %c0_15] : memref<1x1xf32, #tpu.memory_space<smem>>
    return
  }
  func.func @transform_0(%arg0: i32, %arg1: i32) -> (i32, i32) {
    %c0_i32 = arith.constant 0 : i32
    return %arg0, %arg1 : i32, i32
  }
  func.func @transform_1(%arg0: i32, %arg1: i32) -> (i32, i32) {
    %c0_i32 = arith.constant 0 : i32
    %c0_i32_0 = arith.constant 0 : i32
    return %arg0, %c0_i32 : i32, i32
  }
  func.func @transform_2(%arg0: i32, %arg1: i32) -> (i32, i32) {
    %c0_i32 = arith.constant 0 : i32
    return %arg0, %arg1 : i32, i32
  }
  func.func @transform_3(%arg0: i32, %arg1: i32) -> (i32, i32) {
    %c0_i32 = arith.constant 0 : i32
    return %arg0, %arg1 : i32, i32
  }
}

</mosaic_0001>

<bundles_post_ra>
// kernel: tpu_custom_call.1
= control target key start
LH: loop header
LB: loop body
LE: loop exit
PB: predicated region body
PF: predicated region fallthrough
CT: control target
= control target key end

     0   :  { %9 = vsyncpa [#allocation4], 0  ;;  %v21_v1 = vlaneseq  ;;  %v171_v2 = vmov 0   ;;  %s247_s0 = inlined_call_operand.vmem [shape: f32[10,32], index: 0, kind: input, shape index: {}]   ;;  %s248_s1 = inlined_call_operand.vmem [shape: s32[10,1], index: 1, kind: input, shape index: {}]   ;;  %s249_s2 = inlined_call_operand.hbm [shape: f32[1,1], index: 2, kind: output, shape index: {0}]   ;;  %s250_s3 = inlined_call_operand.hbm [shape: f32[10,32], index: 3, kind: output, shape index: {1}]  }
   0x1   :  { %v19_v0 = vld [vmem:[%s248_s1] sm:$0xff]  ;;  %134 = vset.pattern.permute.xlu1 %v171_v2  ;;  %133 = vset.pattern.permute.xlu0 %v171_v2 }
   0x2   :  { %vm46_vm0 = vcmp.eq.s32.totalorder %v19_v0, 0 }
   0x3   :  { %10 = vsyncpa [#allocation3], 0  ;;  %39 = vperm.xlu0 %133, %v19_v0   ;;  %v50_v3 = vsel %vm46_vm0, 1, %v171_v2  ;;  %v22_v4 = vshrl.u32 %v21_v1, 7  ;;  %v20_v5 = vld [vmem:[%s248_s1 + $0x8] sm:$0xff]  ;;  %v32_v9 = vand.u32 127, %v21_v1 }
   0x4   :  { %53 = vperm.xlu1 %134, %v50_v3   ;;  %v172_v12 = vmov 0.0033333334   ;;  %v17_v14 = vld [vmem:[%s247_s0] sm:$0xff]  ;;  %v173_v15 = vmov -5.7037826   ;;  %v18_v21 = vld [vmem:[%s247_s0 + $0x8] sm:$0xff] }
   0x5   :  { %v23_v6 = vadd.s32 8, %v22_v4  ;;  %vm49_vm3 = vcmp.eq.s32.totalorder %v32_v9, 0  ;;  %vm63_vm5 = vcmp.ge.s32.totalorder %v32_v9, 32  ;;  %vm174_vm13 = vmmov 1   ;;  %s175_s0 = smov [#allocation5]  }
   0x6   :  { %s107_s19 = sshll.u32 %s175_s0, 4  ;;  %s108_s19 = int_to_ptr.vmem [resolvable:$true] %s107_s19 }
   0x7   :  { %vm28_vm1 = vcmp.ge.s32.totalorder %v23_v6, 10  ;;  %s135_s20 = scalar_lea.vmem %s108_s19, 256  ;;  %p140_p1 = scmp.lt.s32.totalorder %s108_s19, %s108_s19 }
   0x8   :  { %v30_v7 = vsel %vm28_vm1, 0, %v20_v5  ;;  %p136_p0 = scmp.ne.s32.totalorder %s108_s19, %s135_s20  ;;  %p141_p2 = scmp.lt.s32.totalorder %s135_s20, %s135_s20 }
   0x9   :  { %42 = vperm.xlu0 %133, %v30_v7   ;;  %vm47_vm2 = vcmp.eq.s32.totalorder %v30_v7, 0 }
   0xa   :  { %v51_v8 = vsel %vm47_vm2, 1, %v171_v2  ;;  %p142_p3 = por %p141_p2, %p140_p1 }
   0xb   :  { %56 = vperm.xlu1 %134, %v51_v8  }
   0xc   :  { %p143_p4 = pnand %p142_p3, %p136_p0 }
  0x82   :  { %v40_v10 = vpop.permute.xlu0 %39 }
  0x83   :  { %vm44_vm4 = vcmp.eq.s32.totalorder %v32_v9, %v40_v10  ;;  %v54_v11 = vpop.permute.xlu1 %53 }
  0x84   :  { %v66_v13 = vsel %vm44_vm4, 0.9, %v172_v12  ;;  %vm58_vm6 = vcmp.eq.s32.totalorder %v54_v11, 1  ;;  %v74_v16 = vsel %vm44_vm4, -0.105360515, %v173_v15 }
  0x85   :  { %vm60_vm7 = vmor %vm58_vm6, %vm49_vm3  ;;  %v76_v20 = vsub.f32 %v74_v16, %v17_v14 }
  0x86   :  { %vm210_vm8 = vmor %vm60_vm7, %vm63_vm5 }
  0x87   :  { %v68_v18 = vsel %vm210_vm8, 0.0, %v66_v13  ;;  %vm72_vm14 = vmxor %vm210_vm8, %vm174_vm13 }
  0x88   :  { %70 = vst [vmem:[#allocation5] sm:$0xff] %v68_v18  ;;  %v43_v19 = vpop.permute.xlu0 %42  ;;  %v78_v26 = vmul.f32 %v76_v20, %v68_v18 }
  0x89   :  { %vm45_vm9 = vcmp.eq.s32.totalorder %v32_v9, %v43_v19 }
  0x8a   :  { %v75_v22 = vsel %vm45_vm9, -0.105360515, %v173_v15  ;;  %v57_v23 = vpop.permute.xlu1 %56  ;;  %v67_v24 = vsel %vm45_vm9, 0.9, %v172_v12  ;;  %v80_v29 = vsel %vm72_vm14, %v78_v26, 0.0 }
  0x8b   :  { %vm59_vm10 = vcmp.eq.s32.totalorder %v57_v23, 1  ;;  %v77_v25 = vsub.f32 %v75_v22, %v18_v21 }
  0x8c   :  { %vm61_vm11 = vmor %vm59_vm10, %vm49_vm3 }
  0x8d   :  { %vm65_vm12 = vmor %vm61_vm11, %vm63_vm5 }
  0x8e   :  { %v69_v27 = vsel %vm65_vm12, 0.0, %v67_v24  ;;  %vm73_vm15 = vmxor %vm65_vm12, %vm174_vm13 }
  0x8f   :  { %71 = vst [vmem:[#allocation5 + $0x8] sm:$0xff] %v69_v27  ;;  %v79_v28 = vmul.f32 %v77_v25, %v69_v27 }
  0x91   :  { %v81_v30 = vsel %vm73_vm15, %v79_v28, 0.0 }
  0x92   :  { %v82_v31 = vadd.f32 %v81_v30, %v80_v29 }
  0x94   :  { %83 = vadd.xlane.f32.xlu0 %v82_v31 }
  0x95   :  { %146 = shalt.err (!%p143_p4)
}
  0x96   :  { %s147_s23 = scalar_lea.hbm %s250_s3, 256 }
  0x97   :  { %p148_p5 = scmp.ne.s32.totalorder %s250_s3, %s147_s23  ;;  %p151_p6 = scmp.lt.u32.totalorder %s147_s23, %s250_s3 }
  0x99   :  { %p153_p7 = pnand %p151_p6, %p148_p5 }
  0x9b   :  { %156 = shalt.err (!%p153_p7)
}
  0x9c   :  { %s176_s28 = smov 128   ;;  %s177_s29 = smov 8  }
  0x9d   :  { %113 = dma.vmem_to_hbm [thread:$0]  %s108_s19, 256, %s250_s3, [#allocation3], %s176_s28, %s176_s28, %s177_s29  }
  0x9e   :  { %s157_s8 = scalar_lea.hbm %s249_s2, 16 }
  0x9f   :  { %p158_p8 = scmp.ne.s32.totalorder %s249_s2, %s157_s8  ;;  %p161_p9 = scmp.lt.u32.totalorder %s157_s8, %s249_s2 }
  0xa1   :  { %p163_p10 = pnand %p161_p9, %p158_p8 }
 0x121   :  { %v84_v32 = vpop.xlane.xlu0 %83 }
 0x122   :  { %v85_v33 = vrot.slane %v84_v32, 4 }
 0x124   :  { %v86_v34 = vadd.f32 %v85_v33, %v84_v32 }
 0x126   :  { %v87_v35 = vrot.slane %v86_v34, 2 }
 0x128   :  { %v88_v36 = vadd.f32 %v87_v35, %v86_v34 }
 0x12a   :  { %v89_v37 = vrot.slane %v88_v36, 1 }
 0x12c   :  { %v90_v38 = vadd.f32 %v89_v37, %v88_v36 }
 0x12e   :  { %123 = vpush %v90_v38 }
 0x15f   :  { %s124_s5 = spop %123 }
 0x160   :  { %93 = sst [smem:[#allocation2]] %s124_s5 }
 0x161   :  { %166 = shalt.err (!%p163_p10)
}
 0x162   :  { %s178_s12 = smov [#allocation2]  }
 0x163   :  { %101 = dma.smem_to_hbm %s178_s12, 16, %s249_s2, [#allocation4]  }
 0x164   :  { %167 = dma.done.wait [#allocation4], 16  }
 0x165   :  { %168 = vsyncadd [#allocation4], 4294967280 }
 0x166   :  { %169 = dma.done.wait [#allocation3], 256  }
 0x167   :  { %170 = vsyncadd [#allocation3], 4294967040 }
 0x168   :  { %120 = sfence }
 0x169   :  { %121 = vsyncpa [#allocation3], 1 }
 0x16a   :  { %122 = vsyncpa [#allocation4], 1 }

</bundles_post_ra>
